<compile_context>
chip_gen: v6e
topology: v6e:2x2x1
jax: 0.10.0
libtpu: 0.0.40
codegen_flags: <defaults>
</compile_context>

<pallas_src>
import functools

import jax
import jax.numpy as jnp
from jax.experimental import pallas as pl
from jax.experimental.pallas import tpu as pltpu


LANE_WIDTH_MAX = 2048    # C: lanes per block (multiple of 128)
SUBLANE_ROWS_MAX = 256   # TR: sublane rows per block (multiple of 8)
TARGET_GRID_STEPS = 8    # keep >= ~8 grid steps for v7x 2-TC load balancing


def _cdiv(a, b):
    return -(-a // b)


def _round_up(n, m):
    return _cdiv(n, m) * m


def mlp_kernel(p_ref, x_ref, o_ref):
    """Tiny 2->2->1 MLP fully unrolled on the VPU.

    p_ref : SMEM (9,) f32   [w1_00, w1_01, w1_10, w1_11, b1_0, b1_1, w2_0, w2_1, b2]
    x_ref : VMEM (2, TR, C) f32   feature-major, batch dense on (sublane, lane)
    o_ref : VMEM (TR, C) f32
    """
    x0 = x_ref[0]  # (TR, C) dense plane, full-vreg VPU ops
    x1 = x_ref[1]

    w00 = p_ref[0]
    w01 = p_ref[1]
    w10 = p_ref[2]
    w11 = p_ref[3]
    b10 = p_ref[4]
    b11 = p_ref[5]
    v0 = p_ref[6]
    v1 = p_ref[7]
    b2 = p_ref[8]

    # linear1: h_j = W1[j,0]*x0 + W1[j,1]*x1 + b1[j]   (VALU broadcast FMAs)
    h0 = w00 * x0 + w01 * x1 + b10
    h1 = w10 * x0 + w11 * x1 + b11

    # sigmoid(h) = 0.5*tanh(0.5*h) + 0.5  -> one EUP op per plane, no VALU divide
    s0 = 0.5 * jnp.tanh(0.5 * h0) + 0.5
    s1 = 0.5 * jnp.tanh(0.5 * h1) + 0.5

    # linear2: o = W2[0,0]*s0 + W2[0,1]*s1 + b2
    o_ref[...] = (v0 * s0 + v1 * s1 + b2).astype(o_ref.dtype)


@jax.jit
def model1_forward(x, w1, b1, w2, b2):
    """x: (B, 2); w1: (2, 2); b1: (2,); w2: (1, 2); b2: (1,).

    Matches torch: linear1 -> sigmoid -> linear2 -> .squeeze()
    (shape (B,) for B > 1, scalar for B == 1).
    """
    B = x.shape[0]

    # Feature-major relayout (B,2) -> (2,B): one fused XLA transpose/pad pass.
    # TODO(synk): an in-kernel stride-2 lane de-interleave of the raw (B,2)
    # buffer would remove this extra HBM pass, but lane-strided loads do not
    # lower reliably on Mosaic, so the relayout stays in the wrapper.
    xt = x.astype(jnp.float32).T  # (2, B)

    # Batch tiling onto (sublane, lane): dense (TR, C) planes per feature.
    C = min(LANE_WIDTH_MAX, _round_up(B, 128))
    rows = _cdiv(B, C)
    TR = max(8, min(SUBLANE_ROWS_MAX,
                    _round_up(_cdiv(rows, TARGET_GRID_STEPS), 8)))
    R = _round_up(rows, TR)
    Bp = R * C
    if Bp != B:
        xt = jnp.pad(xt, ((0, 0), (0, Bp - B)))
    x3 = xt.reshape(2, R, C)

    # All weight/bias scalars packed into one small SMEM-resident vector.
    params = jnp.concatenate(
        [w1.reshape(-1), b1.reshape(-1), w2.reshape(-1), b2.reshape(-1)]
    ).astype(jnp.float32)  # (9,)

    out = pl.pallas_call(
        mlp_kernel,
        out_shape=jax.ShapeDtypeStruct((R, C), jnp.float32),
        grid=(R // TR,),
        in_specs=[
            pl.BlockSpec(memory_space=pltpu.MemorySpace.SMEM),   # params (resident)
            pl.BlockSpec((2, TR, C), lambda i: (0, i, 0)),       # x tile, lane-dense
        ],
        out_specs=pl.BlockSpec((TR, C), lambda i: (i, 0)),
        compiler_params=pltpu.CompilerParams(
            dimension_semantics=("parallel",)
        ),
    )(params, x3)

    # Row-major (R, C) flatten == original batch order; drop padding, then
    # torch .squeeze(): remove all size-1 dims (scalar for B == 1).
    y = out.reshape(-1)[:B]
    return jnp.squeeze(y)


if __name__ == "__main__":
    key = jax.random.PRNGKey(0)
    kx, k1, k2, k3, k4 = jax.random.split(key, 5)

    # Deterministic PyTorch-Linear-style uniform init.
    bound1 = 1.0 / jnp.sqrt(2.0)  # linear1: in=2, out=2
    w1 = jax.random.uniform(k1, (2, 2), jnp.float32, -bound1, bound1)
    b1 = jax.random.uniform(k2, (2,), jnp.float32, -bound1, bound1)
    bound2 = 1.0 / jnp.sqrt(2.0)  # linear2: in=2, out=1
    w2 = jax.random.uniform(k3, (1, 2), jnp.float32, -bound2, bound2)
    b2 = jax.random.uniform(k4, (1,), jnp.float32, -bound2, bound2)

    # Small example input: batch=8, features=2
    x = jax.random.normal(kx, (8, 2), jnp.float32)

    y = model1_forward(x, w1, b1, w2, b2)
    y = jax.block_until_ready(y)

    # Pure-JAX reference.
    h = 1.0 / (1.0 + jnp.exp(-(x @ w1.T + b1)))
    ref = jnp.squeeze(h @ w2.T + b2)

    assert y.shape == (8,), y.shape
    assert jnp.allclose(y, ref, atol=1e-5, rtol=1e-5)

    print("KERNEL_OK")
</pallas_src>

<mosaic_0001>
module attributes {stable_mosaic.version = 11 : i64} {
  func.func @mlp_kernel(%arg0: i32, %arg1: memref<9xf32, #tpu.memory_space<smem>>, %arg2: memref<2x8x128xf32, #tpu.memory_space<vmem>>, %arg3: memref<8x128xf32, #tpu.memory_space<vmem>>) attributes {dimension_semantics = [#tpu.dimension_semantics<parallel>], iteration_bounds = array<i64: 1>, scalar_prefetch = 0 : i64, scratch_operands = 0 : i64, tpu.core_type = #tpu.core_type<tc>, window_params = [{transform_indices = @transform_0, window_bounds = array<i64: 9>}, {transform_indices = @transform_1, window_bounds = array<i64: 2, 8, 128>}, {transform_indices = @transform_2, window_bounds = array<i64: 8, 128>}]} {
    %c0 = arith.constant 0 : index
    %c0_0 = arith.constant 0 : index
    %c0_1 = arith.constant 0 : index
    %0 = vector.load %arg2[%c0, %c0_0, %c0_1] : memref<2x8x128xf32, #tpu.memory_space<vmem>>, vector<1x8x128xf32>
    %1 = vector.shape_cast %0 : vector<1x8x128xf32> to vector<8x128xf32>
    %c1 = arith.constant 1 : index
    %c0_2 = arith.constant 0 : index
    %c0_3 = arith.constant 0 : index
    %2 = vector.load %arg2[%c1, %c0_2, %c0_3] : memref<2x8x128xf32, #tpu.memory_space<vmem>>, vector<1x8x128xf32>
    %3 = vector.shape_cast %2 : vector<1x8x128xf32> to vector<8x128xf32>
    %c0_4 = arith.constant 0 : index
    %4 = memref.load %arg1[%c0_4] : memref<9xf32, #tpu.memory_space<smem>>
    %c1_5 = arith.constant 1 : index
    %5 = memref.load %arg1[%c1_5] : memref<9xf32, #tpu.memory_space<smem>>
    %c2 = arith.constant 2 : index
    %6 = memref.load %arg1[%c2] : memref<9xf32, #tpu.memory_space<smem>>
    %c3 = arith.constant 3 : index
    %7 = memref.load %arg1[%c3] : memref<9xf32, #tpu.memory_space<smem>>
    %c4 = arith.constant 4 : index
    %8 = memref.load %arg1[%c4] : memref<9xf32, #tpu.memory_space<smem>>
    %c5 = arith.constant 5 : index
    %9 = memref.load %arg1[%c5] : memref<9xf32, #tpu.memory_space<smem>>
    %c6 = arith.constant 6 : index
    %10 = memref.load %arg1[%c6] : memref<9xf32, #tpu.memory_space<smem>>
    %c7 = arith.constant 7 : index
    %11 = memref.load %arg1[%c7] : memref<9xf32, #tpu.memory_space<smem>>
    %c8 = arith.constant 8 : index
    %12 = memref.load %arg1[%c8] : memref<9xf32, #tpu.memory_space<smem>>
    %13 = vector.broadcast %4 : f32 to vector<8x128xf32>
    %14 = arith.mulf %13, %1 : vector<8x128xf32>
    %15 = vector.broadcast %5 : f32 to vector<8x128xf32>
    %16 = arith.mulf %15, %3 : vector<8x128xf32>
    %17 = arith.addf %14, %16 : vector<8x128xf32>
    %18 = vector.broadcast %8 : f32 to vector<8x128xf32>
    %19 = arith.addf %17, %18 : vector<8x128xf32>
    %20 = vector.broadcast %6 : f32 to vector<8x128xf32>
    %21 = arith.mulf %20, %1 : vector<8x128xf32>
    %22 = vector.broadcast %7 : f32 to vector<8x128xf32>
    %23 = arith.mulf %22, %3 : vector<8x128xf32>
    %24 = arith.addf %21, %23 : vector<8x128xf32>
    %25 = vector.broadcast %9 : f32 to vector<8x128xf32>
    %26 = arith.addf %24, %25 : vector<8x128xf32>
    %cst = arith.constant 5.000000e-01 : f32
    %27 = vector.broadcast %cst : f32 to vector<8x128xf32>
    %28 = arith.mulf %27, %19 : vector<8x128xf32>
    %29 = math.tanh %28 : vector<8x128xf32>
    %cst_6 = arith.constant 5.000000e-01 : f32
    %30 = vector.broadcast %cst_6 : f32 to vector<8x128xf32>
    %31 = arith.mulf %30, %29 : vector<8x128xf32>
    %cst_7 = arith.constant 5.000000e-01 : f32
    %32 = vector.broadcast %cst_7 : f32 to vector<8x128xf32>
    %33 = arith.addf %31, %32 : vector<8x128xf32>
    %cst_8 = arith.constant 5.000000e-01 : f32
    %34 = vector.broadcast %cst_8 : f32 to vector<8x128xf32>
    %35 = arith.mulf %34, %26 : vector<8x128xf32>
    %36 = math.tanh %35 : vector<8x128xf32>
    %cst_9 = arith.constant 5.000000e-01 : f32
    %37 = vector.broadcast %cst_9 : f32 to vector<8x128xf32>
    %38 = arith.mulf %37, %36 : vector<8x128xf32>
    %cst_10 = arith.constant 5.000000e-01 : f32
    %39 = vector.broadcast %cst_10 : f32 to vector<8x128xf32>
    %40 = arith.addf %38, %39 : vector<8x128xf32>
    %41 = vector.broadcast %10 : f32 to vector<8x128xf32>
    %42 = arith.mulf %41, %33 : vector<8x128xf32>
    %43 = vector.broadcast %11 : f32 to vector<8x128xf32>
    %44 = arith.mulf %43, %40 : vector<8x128xf32>
    %45 = arith.addf %42, %44 : vector<8x128xf32>
    %46 = vector.broadcast %12 : f32 to vector<8x128xf32>
    %47 = arith.addf %45, %46 : vector<8x128xf32>
    %c0_11 = arith.constant 0 : index
    %c0_12 = arith.constant 0 : index
    %48 = vector.load %arg3[%c0_11, %c0_12] : memref<8x128xf32, #tpu.memory_space<vmem>>, vector<8x128xf32>
    tpu.vector_store %arg3[%c0_11, %c0_12], %47 {strides = array<i32>} : memref<8x128xf32, #tpu.memory_space<vmem>>, vector<8x128xf32>,
    return
  }
  func.func @transform_0(%arg0: i32) -> i32 {
    %c0_i32 = arith.constant 0 : i32
    %c0_i32_0 = arith.constant 0 : i32
    return %c0_i32 : i32
  }
  func.func @transform_1(%arg0: i32) -> (i32, i32, i32) {
    %c0_i32 = arith.constant 0 : i32
    %c0_i32_0 = arith.constant 0 : i32
    %c0_i32_1 = arith.constant 0 : i32
    return %c0_i32, %arg0, %c0_i32_0 : i32, i32, i32
  }
  func.func @transform_2(%arg0: i32) -> (i32, i32) {
    %c0_i32 = arith.constant 0 : i32
    %c0_i32_0 = arith.constant 0 : i32
    return %arg0, %c0_i32 : i32, i32
  }
}

</mosaic_0001>

<bundles_post_ra>
// kernel: model1_forward.1
= control target key start
LH: loop header
LB: loop body
LE: loop exit
PB: predicated region body
PF: predicated region fallthrough
CT: control target
= control target key end

     0   :  { %7 = vsyncpa [#allocation3], 0  ;;  %s127_s0 = inlined_call_operand.vmem [shape: f32[9], index: 0, kind: input, shape index: {}]   ;;  %s128_s1 = inlined_call_operand.vmem [shape: f32[2,8,128], index: 1, kind: input, shape index: {}]   ;;  %s129_s2 = inlined_call_operand.vmem [shape: f32[8,128], index: 2, kind: output, shape index: {}]  }
   0x1   :  { %s14_s11 = sshll.u32 %s127_s0, 4  ;;  %s15_s11 = int_to_ptr.vmem [resolvable:$true] %s14_s11 }
   0x2   :  { %s85_s12 = scalar_lea.vmem %s15_s11, 16  ;;  %p90_p1 = scmp.lt.s32.totalorder %s15_s11, %s15_s11 }
   0x3   :  { %p86_p0 = scmp.ne.s32.totalorder %s15_s11, %s85_s12  ;;  %p91_p2 = scmp.lt.s32.totalorder %s85_s12, %s85_s12 }
   0x5   :  { %p92_p3 = por %p91_p2, %p90_p1 }
   0x7   :  { %p93_p4 = pnand %p92_p3, %p86_p0 }
   0x9   :  { %96 = shalt.err (!%p93_p4)
}
   0xa   :  { %s99_s13 = smov [#allocation2]  }
   0xb   :  { %17 = dma.vmem_to_smem %s15_s11, 16, %s99_s13, [#allocation3]  }
   0xc   :  { %97 = dma.done.wait [#allocation3], 16  }
   0xd   :  { %98 = vsyncadd [#allocation3], 4294967280 }
   0xe   :  { %23 = sfence }
   0xf   :  { %s27_s14 = sld [smem:[#allocation2]]  ;;  %v24_v0 = vld [vmem:[%s128_s1] sm:$0xff]  ;;  %v71_v1 = vld [vmem:[%s128_s1 + $0x8] sm:$0xff] }
  0x10   :  { %s72_s15 = sld [smem:[#allocation2 + $0x1]] }
  0x11   :  { %s73_s16 = sld [smem:[#allocation2 + $0x2]] }
  0x12   :  { %s74_s17 = sld [smem:[#allocation2 + $0x3]] }
  0x13   :  { %s75_s0 = sld [smem:[#allocation2 + $0x4]] }
  0x14   :  { %s76_s22 = sld [smem:[#allocation2 + $0x5]] }
  0x15   :  { %v36_v2 = vstv %s27_s14  ;;  %s77_s1 = sld [smem:[#allocation2 + $0x6]] }
  0x16   :  { %v37_v3 = vmul.f32 %v36_v2, %v24_v0  ;;  %v38_v4 = vstv %s72_s15  ;;  %s78_s23 = sld [smem:[#allocation2 + $0x7]] }
  0x17   :  { %v39_v5 = vmul.f32 %v71_v1, %v38_v4  ;;  %v43_v6 = vstv %s73_s16  ;;  %s79_s24 = sld [smem:[#allocation2 + $0x8]] }
  0x18   :  { %v44_v7 = vmul.f32 %v43_v6, %v24_v0  ;;  %v45_v8 = vstv %s74_s17 }
  0x19   :  { %v40_v9 = vadd.f32 %v39_v5, %v37_v3  ;;  %v41_v10 = vstv %s75_s0  ;;  %v46_v11 = vmul.f32 %v71_v1, %v45_v8 }
  0x1a   :  { %v48_v12 = vstv %s76_s22 }
  0x1b   :  { %v42_v13 = vadd.f32 %v41_v10, %v40_v9  ;;  %v47_v14 = vadd.f32 %v46_v11, %v44_v7  ;;  %v58_v21 = vstv %s77_s1 }
  0x1c   :  { %v60_v24 = vstv %s78_s23 }
  0x1d   :  { %v49_v15 = vadd.f32 %v48_v12, %v47_v14  ;;  %v50_v16 = vmul.f32 0.5, %v42_v13  ;;  %v63_v28 = vstv %s79_s24 }
  0x1f   :  { %81 = vtanh.f32 %v50_v16  ;;  %v54_v17 = vmul.f32 0.5, %v49_v15 }
  0x21   :  { %83 = vtanh.f32 %v54_v17 }
  0x2c   :  { %v82_v18 = vpop.eup %81 }
  0x2d   :  { %v52_v19 = vmul.f32 0.5, %v82_v18 }
  0x2e   :  { %v84_v20 = vpop.eup %83 }
  0x2f   :  { %v53_v22 = vadd.f32 0.5, %v52_v19  ;;  %v56_v23 = vmul.f32 0.5, %v84_v20 }
  0x31   :  { %v57_v25 = vadd.f32 0.5, %v56_v23  ;;  %v59_v26 = vmul.f32 %v58_v21, %v53_v22 }
  0x33   :  { %v61_v27 = vmul.f32 %v60_v24, %v57_v25 }
  0x35   :  { %v62_v29 = vadd.f32 %v61_v27, %v59_v26 }
  0x37   :  { %v64_v30 = vadd.f32 %v63_v28, %v62_v29 }
  0x39   :  { %65 = vst [vmem:[%s129_s2] sm:$0xff] %v64_v30 }
  0x3a   :  { %70 = vsyncpa [#allocation3], 1 }

</bundles_post_ra>
